<compile_context>
chip_gen: v7x
topology: tpu7x:2x2x1
jax: 0.10.0
libtpu: 0.0.40
codegen_flags: <defaults>
</compile_context>

<pallas_src>
import jax
import jax.numpy as jnp
from jax import lax
from jax.experimental import pallas as pl
from jax.experimental.pallas import tpu as pltpu

_BLOCK_BYTES_TARGET = 2 * 1024 * 1024     # per-input block; safe on v5e/v6e/v7x
_MAX_TILE_ROWS = 8192                     # raised so small-D inputs still reach ~2 MiB blocks
_VMEM_LIMIT_BYTES = 48 * 1024 * 1024      # > v5e(16)/v6e(32) scoped defaults, < v7x 64 MiB/TC
_FUSED_MAX_PRED_BYTES = 4 * 1024 * 1024   # single-block fused path threshold (f32 bytes of p)


def _round_up(x, m):
    return -(-x // m) * m


def _cdiv(a, b):
    return -(-a // b)


def _pow_term(one_minus_p, gamma):
    """(1 - p) ** gamma without float pow when gamma is integral (EUP saver)."""
    g = float(gamma)
    if g == 2.0:
        return one_minus_p * one_minus_p
    if g.is_integer():
        return lax.integer_pow(one_minus_p, int(g))
    return jnp.power(one_minus_p, jnp.float32(g))


# --------------------------- pass 1: reduction -------------------------------
def _make_mean_kernel(gamma, scale_factor, rows, tile_r, inner, n_tiles):
    """Per-chunk partial of -alpha * mean((1-p)^gamma); grid = (nc, inner)."""

    def kernel(p_ref, out_ref, acc_ref):
        c = pl.program_id(0)
        t = pl.program_id(1)

        @pl.when(t == 0)
        def _init():
            acc_ref[...] = jnp.zeros_like(acc_ref)

        g_idx = c * inner + t                 # true (unclamped) tile index
        valid_rows = rows - g_idx * tile_r    # <=0: overflow iter, <tile_r: ragged tail

        p = p_ref[...].astype(jnp.float32)
        term = _pow_term(1.0 - p, gamma)      # (tile_r, D)
        lanes = term.shape[-1]

        is_full = valid_rows >= tile_r

        @pl.when(is_full)
        def _full_tile():
            # row-group reduce (plain VALU adds across vregs) into the (8, D) acc
            acc_ref[...] += jnp.sum(term.reshape(tile_r // 8, 8, lanes), axis=0)

        @pl.when(jnp.logical_not(is_full))
        def _tail_tile():
            row_idx = lax.broadcasted_iota(jnp.int32, term.shape, 0)
            masked = jnp.where(row_idx < valid_rows, term, 0.0)
            acc_ref[...] += jnp.sum(masked.reshape(tile_r // 8, 8, lanes), axis=0)

        @pl.when(t == pl.num_programs(1) - 1)
        def _finalize():
            part = jnp.sum(acc_ref[...]) * scale_factor   # carries -alpha / n_elems
            out_ref[...] = jnp.broadcast_to(part, out_ref.shape).astype(jnp.float32)

    return kernel


# --------------------------- pass 2: elementwise ------------------------------
def _make_output_kernel(out_dtype):
    """out = scale * gt * log(p); gt block may be (tile_r, 1) -> lane-broadcast."""

    def kernel(scale_ref, p_ref, g_ref, o_ref):
        s = scale_ref[0, 0]                   # f32 scalar from SMEM (= -alpha*mean)
        p = p_ref[...].astype(jnp.float32)
        g = g_ref[...].astype(jnp.float32)
        o_ref[...] = ((s * g) * jnp.log(p)).astype(out_dtype)

    return kernel


# ------------------------ fused single-block path -----------------------------
def _make_fused_kernel(gamma, alpha, n_elems, out_dtype):
    """Whole tensors resident in VMEM: 1 read of p + 1 read of gt + 1 write."""
    scale_factor = -float(alpha) / float(n_elems)

    def kernel(p_ref, g_ref, o_ref):
        p = p_ref[...].astype(jnp.float32)
        g = g_ref[...].astype(jnp.float32)
        s = jnp.sum(_pow_term(1.0 - p, gamma)) * scale_factor
        o_ref[...] = ((s * g) * jnp.log(p)).astype(out_dtype)

    return kernel


class BinFocalLossMultiOutput:
    """JAX/Pallas port of bin_focal_loss_multi_output."""

    def __init__(self, alpha=0.5, gamma=2):
        self.alpha = float(alpha)
        self.gamma = float(gamma)

    def __call__(self, predict, gt):
        out_shape_full = predict.shape
        D = predict.shape[-1]
        p2d = predict.reshape(-1, D)
        rows = p2d.shape[0]

        if predict.shape != gt.shape:
            # torch: gt = gt.unsqueeze(-1).repeat(1, 1, D).  Keep gt un-broadcast
            # (one value per row), lane-broadcast inside the kernel.
            g2d = gt.reshape(-1, 1)
        else:
            g2d = gt.reshape(-1, D)

        # Lane-dense flattening when gt matches predict elementwise: present a
        # (N/L, L) view with L a large multiple of 128 (unmasked full-lane stores).
        if g2d.shape[1] == D:
            n_total = rows * D
            for lane_w in (4096, 2048, 1024, 512, 256, 128):
                if n_total % lane_w == 0:
                    p2d = p2d.reshape(n_total // lane_w, lane_w)
                    g2d = g2d.reshape(n_total // lane_w, lane_w)
                    rows, D = p2d.shape
                    break

        gcols = g2d.shape[1]
        n_elems = rows * D                    # torch mean over all of predict
        # torch promotes with the f32 alpha tensor -> f32 output.
        out_dtype = jnp.float32

        # ---- fused single-block path for small tensors ------------------------
        if n_elems * 4 <= _FUSED_MAX_PRED_BYTES:
            out2d = pl.pallas_call(
                _make_fused_kernel(self.gamma, self.alpha, n_elems, out_dtype),
                out_shape=jax.ShapeDtypeStruct((rows, D), out_dtype),
                compiler_params=pltpu.CompilerParams(
                    vmem_limit_bytes=_VMEM_LIMIT_BYTES),
            )(p2d, g2d)
            return out2d.reshape(out_shape_full)

        # ---- tiling: biggest full-width row tile within the block-bytes target
        tile_r = max(8, (_BLOCK_BYTES_TARGET // max(1, D * 4)) // 8 * 8)
        tile_r = min(tile_r, _MAX_TILE_ROWS, _round_up(rows, 8))
        n_tiles = _cdiv(rows, tile_r)         # no padding; tail handled in-kernel

        # ---- pass 1: scale = -alpha * mean((1 - p) ** gamma) ------------------
        nc = 2 if n_tiles >= 2 else 1         # v7x: always split across both TCs
        inner = _cdiv(n_tiles, nc)
        scale_factor = -self.alpha / float(n_elems)

        def p_index_map(c, t):
            # clamp the overflow iteration of the last chunk to a valid tile;
            # its contribution is zero-masked in the kernel.
            return (jnp.minimum(c * inner + t, n_tiles - 1), 0)

        partials = pl.pallas_call(
            _make_mean_kernel(self.gamma, scale_factor, rows, tile_r, inner, n_tiles),
            out_shape=jax.ShapeDtypeStruct((nc, 8, 128), jnp.float32),
            grid_spec=pltpu.PrefetchScalarGridSpec(
                num_scalar_prefetch=0,
                grid=(nc, inner),
                in_specs=[pl.BlockSpec((tile_r, D), p_index_map)],
                out_specs=pl.BlockSpec((1, 8, 128), lambda c, t: (c, 0, 0)),
                scratch_shapes=[pltpu.VMEM((8, D), jnp.float32)],
            ),
            compiler_params=pltpu.CompilerParams(
                dimension_semantics=("parallel", "arbitrary"),
                vmem_limit_bytes=_VMEM_LIMIT_BYTES),
        )(p2d)

        # tiny cross-chunk sum; -alpha/n already folded into the partials.
        scale = jnp.sum(partials[:, 0, 0]).reshape(1, 1).astype(jnp.float32)

        # ---- pass 2: out = scale * gt * log(p) ---------------------------------
        out2d = pl.pallas_call(
            _make_output_kernel(out_dtype),
            out_shape=jax.ShapeDtypeStruct((rows, D), out_dtype),
            grid_spec=pltpu.PrefetchScalarGridSpec(
                num_scalar_prefetch=0,
                grid=(n_tiles,),
                in_specs=[
                    pl.BlockSpec(memory_space=pltpu.MemorySpace.SMEM),  # scale (1,1)
                    pl.BlockSpec((tile_r, D), lambda i: (i, 0)),        # predict
                    pl.BlockSpec((tile_r, gcols), lambda i: (i, 0)),    # gt (maybe (tile_r,1))
                ],
                out_specs=pl.BlockSpec((tile_r, D), lambda i: (i, 0)),
            ),
            compiler_params=pltpu.CompilerParams(
                dimension_semantics=("parallel",),
                vmem_limit_bytes=_VMEM_LIMIT_BYTES),
        )(scale, p2d, g2d)

        return out2d.reshape(out_shape_full)


# ----------------------------- pure-JAX reference -----------------------------
def _ref_loss(predict, gt, alpha=0.5, gamma=2.0):
    if predict.shape != gt.shape:
        gt = jnp.repeat(gt[..., None], predict.shape[-1], axis=-1)
    p = predict.astype(jnp.float32)
    g = gt.astype(jnp.float32)
    return -alpha * (jnp.mean((1.0 - p) ** gamma) * g * jnp.log(p))


if __name__ == "__main__":
    key = jax.random.PRNGKey(0)
    k1, k2, k3, k4, k5, k6 = jax.random.split(key, 6)

    loss = BinFocalLossMultiOutput(alpha=0.5, gamma=2)
    ok = True
    max_err = 0.0

    def _check(out, ref):
        global ok, max_err
        err = float(jnp.max(jnp.abs(out - ref)))
        max_err = max(max_err, err)
        ok = ok and bool(jnp.allclose(out, ref, rtol=1e-4, atol=1e-6))

    # --- small shapes (batch=2, labels=8, classes=128): fused single-block path
    predict_s = jax.nn.sigmoid(jax.random.normal(k1, (2, 8, 128), jnp.float32))
    gt_small = jax.random.bernoulli(k2, 0.3, (2, 8)).astype(jnp.float32)
    gt_full_s = jax.random.bernoulli(k3, 0.3, (2, 8, 128)).astype(jnp.float32)

    out = jax.block_until_ready(loss(predict_s, gt_small))      # broadcast-gt path
    _check(out, _ref_loss(predict_s, gt_small, 0.5, 2.0))

    out = jax.block_until_ready(loss(predict_s, gt_full_s))     # equal-shape path
    _check(out, _ref_loss(predict_s, gt_full_s, 0.5, 2.0))

    # --- medium shapes: exercise the 2-pass path (ragged tail + megacore split)
    predict_m = jax.nn.sigmoid(jax.random.normal(k4, (4, 600, 512), jnp.float32))
    gt_small_m = jax.random.bernoulli(k5, 0.3, (4, 600)).astype(jnp.float32)
    gt_full_m = jax.random.bernoulli(k6, 0.3, (4, 600, 512)).astype(jnp.float32)

    out = jax.block_until_ready(loss(predict_m, gt_small_m))    # (rows, D) + (rows, 1) gt
    _check(out, _ref_loss(predict_m, gt_small_m, 0.5, 2.0))

    out = jax.block_until_ready(loss(predict_m, gt_full_m))     # lane-dense flattened
    _check(out, _ref_loss(predict_m, gt_full_m, 0.5, 2.0))

    if ok:
        print("KERNEL_OK")
    else:
        print("MISMATCH", max_err)
</pallas_src>

<mosaic_0001>
module attributes {stable_mosaic.version = 11 : i64} {
  func.func @kernel(%arg0: memref<16x128xf32, #tpu.memory_space<vmem>>, %arg1: memref<16x1xf32, #tpu.memory_space<vmem>>, %arg2: memref<16x128xf32, #tpu.memory_space<vmem>>) attributes {dimension_semantics = [], scalar_prefetch = 0 : i64, scratch_operands = 0 : i64, tpu.core_type = #tpu.core_type<tc>} {
    %c0 = arith.constant 0 : index
    %c0_0 = arith.constant 0 : index
    %0 = vector.load %arg0[%c0, %c0_0] : memref<16x128xf32, #tpu.memory_space<vmem>>, vector<16x128xf32>
    %c0_1 = arith.constant 0 : index
    %c0_2 = arith.constant 0 : index
    %1 = vector.load %arg1[%c0_1, %c0_2] : memref<16x1xf32, #tpu.memory_space<vmem>>, vector<16x1xf32>
    %cst = arith.constant 1.000000e+00 : f32
    %2 = vector.broadcast %cst : f32 to vector<16x128xf32>
    %3 = arith.subf %2, %0 : vector<16x128xf32>
    %4 = arith.mulf %3, %3 : vector<16x128xf32>
    %5 = vector.shape_cast %4 : vector<16x128xf32> to vector<1x16x128xf32>
    %cst_3 = arith.constant dense<0.000000e+00> : vector<1xf32>
    %6 = vector.multi_reduction <add>, %5, %cst_3 [1, 2] : vector<1x16x128xf32> to vector<1xf32>
    %7 = vector.shape_cast %6 : vector<1xf32> to vector<1x1x1xf32>
    %8 = vector.extract %7[0, 0, 0] : f32 from vector<1x1x1xf32>
    %cst_4 = arith.constant -2.44140625E-4 : f32
    %9 = arith.mulf %8, %cst_4 : f32
    %10 = vector.broadcast %9 : f32 to vector<16x1xf32>
    %11 = arith.mulf %10, %1 : vector<16x1xf32>
    %12 = math.log %0 : vector<16x128xf32>
    %13 = vector.broadcast %11 : vector<16x1xf32> to vector<16x128xf32>
    %14 = arith.mulf %13, %12 : vector<16x128xf32>
    %c0_5 = arith.constant 0 : index
    %c0_6 = arith.constant 0 : index
    %15 = vector.load %arg2[%c0_5, %c0_6] : memref<16x128xf32, #tpu.memory_space<vmem>>, vector<16x128xf32>
    tpu.vector_store %arg2[%c0_5, %c0_6], %14 {strides = array<i32>} : memref<16x128xf32, #tpu.memory_space<vmem>>, vector<16x128xf32>,
    return
  }
}

</mosaic_0001>

<bundles_post_ra>
// kernel: tpu_custom_call.1
= control target key start
LH: loop header
LB: loop body
LE: loop exit
PB: predicated region body
PF: predicated region fallthrough
CT: control target
= control target key end

     0   :  { %s147_s0 = inlined_call_operand.vmem [shape: f32[16,128], index: 0, kind: input, shape index: {}]   ;;  %s148_s1 = inlined_call_operand.vmem [shape: f32[16,1], index: 1, kind: input, shape index: {}]   ;;  %s149_s2 = inlined_call_operand.hbm [shape: f32[16,128], index: 2, kind: output, shape index: {}]  }
   0x1   :  { %v12_v0 = vld [vmem:[%s147_s0] sm:$0xff]  ;;  %v13_v1 = vld [vmem:[%s147_s0 + $0x8] sm:$0xff] }
   0x2   :  { %7 = vsyncpa [#allocation3], 0  ;;  %v16_v2 = vsub.f32 1.0, %v12_v0  ;;  %v17_v3 = vsub.f32 1.0, %v13_v1  ;;  %v104_v7 = vmov 0   ;;  %v14_v15 = vld [vmem:[%s148_s1] sm:$0xff]  ;;  %76 = vlog2.f32 %v12_v0 }
   0x3   :  { %75 = vset.pattern.permute.xlu1 %v104_v7  ;;  %74 = vset.pattern.permute.xlu0 %v104_v7  ;;  %v15_v16 = vld [vmem:[%s148_s1 + $0x8] sm:$0xff]  ;;  %78 = vlog2.f32 %v13_v1  ;;  %s105_s18 = smov [#allocation2]  }
   0x4   :  { %v18_v4 = vmul.f32 %v16_v2, %v16_v2  ;;  %v19_v5 = vmul.f32 %v17_v3, %v17_v3  ;;  %s57_s19 = sshll.u32 %s105_s18, 4  ;;  %s58_s19 = int_to_ptr.vmem [resolvable:$true] %s57_s19 }
   0x5   :  { %s80_s1 = scalar_lea.vmem %s58_s19, 256  ;;  %p85_p1 = scmp.lt.s32.totalorder %s58_s19, %s58_s19 }
   0x6   :  { %v20_v6 = vadd.f32 %v19_v5, %v18_v4  ;;  %p81_p0 = scmp.ne.s32.totalorder %s58_s19, %s80_s1  ;;  %p86_p2 = scmp.lt.s32.totalorder %s80_s1, %s80_s1 }
   0x8   :  { %21 = vadd.xlane.f32.xlu0 %v20_v6  ;;  %p87_p3 = por %p86_p2, %p85_p1 }
   0xa   :  { %p88_p4 = pnand %p87_p3, %p81_p0 }
   0xc   :  { %v77_v20 = vpop.eup %76 }
   0xd   :  { %v79_v21 = vpop.eup %78  ;;  %v35_v23 = vmul.f32 0.6931472, %v77_v20 }
   0xe   :  { %v37_v22 = vmul.f32 0.6931472, %v79_v21 }
  0x95   :  { %v22_v8 = vpop.xlane.xlu0 %21 }
  0x96   :  { %v23_v9 = vrot.slane %v22_v8, 4 }
  0x98   :  { %v24_v10 = vadd.f32 %v23_v9, %v22_v8 }
  0x9a   :  { %v25_v11 = vrot.slane %v24_v10, 2 }
  0x9c   :  { %v26_v12 = vadd.f32 %v25_v11, %v24_v10 }
  0x9e   :  { %v27_v13 = vrot.slane %v26_v12, 1 }
  0xa0   :  { %v28_v14 = vadd.f32 %v27_v13, %v26_v12 }
  0xa2   :  { %68 = vpush %v28_v14 }
  0xd3   :  { %s69_s13 = spop %68 }
  0xd4   :  { %s30_s17 = smul.f32 -0.00024414063, %s69_s13 }
  0xd6   :  { %v31_v17 = vstv %s30_s17 }
  0xd7   :  { %v32_v18 = vmul.f32 %v31_v17, %v14_v15  ;;  %v33_v19 = vmul.f32 %v31_v17, %v15_v16 }
  0xd9   :  { %45 = vperm.xlu1 %75, %v33_v19   ;;  %40 = vperm.xlu0 %74, %v32_v18  }
 0x158   :  { %v46_v24 = vpop.permute.xlu1 %45  ;;  %v41_v25 = vpop.permute.xlu0 %40 }
 0x159   :  { %v49_v26 = vmul.f32 %v46_v24, %v37_v22  ;;  %v48_v27 = vmul.f32 %v41_v25, %v35_v23 }
 0x15b   :  { %51 = vst [vmem:[#allocation2 + $0x8] sm:$0xff] %v49_v26  ;;  %50 = vst [vmem:[#allocation2] sm:$0xff] %v48_v27 }
 0x15c   :  { %91 = shalt.err (!%p88_p4)
}
 0x15d   :  { %s92_s22 = scalar_lea.hbm %s149_s2, 256 }
 0x15e   :  { %p93_p5 = scmp.ne.s32.totalorder %s149_s2, %s92_s22  ;;  %p96_p6 = scmp.lt.u32.totalorder %s92_s22, %s149_s2 }
 0x160   :  { %p98_p7 = pnand %p96_p6, %p93_p5 }
 0x162   :  { %101 = shalt.err (!%p98_p7)
}
 0x163   :  { %s106_s27 = smov 128   ;;  %s107_s28 = smov 8  }
 0x164   :  { %63 = dma.vmem_to_hbm [thread:$0]  %s58_s19, 256, %s149_s2, [#allocation3], %s106_s27, %s106_s27, %s107_s28  }
 0x165   :  { %102 = dma.done.wait [#allocation3], 256  }
 0x166   :  { %103 = vsyncadd [#allocation3], 4294967040 }
 0x167   :  { %67 = vsyncpa [#allocation3], 1 }

</bundles_post_ra>
